<compile_context>
chip_gen: v7x
topology: tpu7x:2x2x1
jax: 0.10.0
libtpu: 0.0.40
codegen_flags: <defaults>
</compile_context>

<pallas_src>
import functools

import jax
import jax.numpy as jnp
from jax.experimental import pallas as pl
from jax.experimental.pallas import tpu as pltpu


def _vmem_limit_bytes():
    # Generation-aware scoped-VMEM budget: ~3/4 of physical, capped at 96 MiB.
    # (v5e/v6e: 128 MiB physical -> 96 MiB; v7x: 64 MiB physical -> 48 MiB.)
    try:
        cap = pltpu.get_tpu_info().vmem_capacity_bytes
    except Exception:
        cap = 64 * 1024 * 1024
    return int(min(cap * 3 // 4, 96 * 1024 * 1024))


VMEM_LIMIT = _vmem_limit_bytes()


def _pick_tile(dim, cap, align, prefer=None):
    """Largest divisor of `dim` <= cap that is a multiple of `prefer` (if given),
    else of `align`; falls back to the full dim (full-extent blocks are always
    layout-legal)."""
    if dim <= cap:
        return dim
    for a in ([prefer] if prefer else []) + [align]:
        if a is None or a > cap:
            continue
        best = None
        t = a
        while t <= cap:
            if dim % t == 0:
                best = t
            t += a
        if best is not None:
            return best
    # TODO(synk): pad/mask ragged dims instead of a full-extent fallback block
    # (can exceed the VMEM budget for awkward shapes).
    return dim


# ----------------------------- Pallas kernels ------------------------------ #

def _matmul_kernel(x_ref, w_ref, b_ref, o_ref, acc_ref):
    # Tiled y = x @ w + b, K accumulated in an f32 VMEM scratch.
    k = pl.program_id(2)

    @pl.when(k == 0)
    def _():
        acc_ref[...] = jnp.zeros_like(acc_ref)

    acc_ref[...] += jnp.dot(x_ref[...].astype(jnp.bfloat16), w_ref[...],
                            preferred_element_type=jnp.float32)

    @pl.when(k == pl.num_programs(2) - 1)
    def _():
        o_ref[...] = (acc_ref[...] + b_ref[...]).astype(o_ref.dtype)


def matmul_pallas(x, w, b, *, out_dtype=jnp.bfloat16,
                  tm_cap=256, tn_cap=512, tk_cap=512):
    M, K = x.shape
    N = w.shape[1]
    tm = _pick_tile(M, tm_cap, 8)
    tn = _pick_tile(N, tn_cap, 128, prefer=256)
    tk = _pick_tile(K, tk_cap, 128, prefer=256)
    grid = (M // tm, N // tn, K // tk)
    return pl.pallas_call(
        _matmul_kernel,
        out_shape=jax.ShapeDtypeStruct((M, N), out_dtype),
        grid=grid,
        in_specs=[
            pl.BlockSpec((tm, tk), lambda i, j, k: (i, k)),
            pl.BlockSpec((tk, tn), lambda i, j, k: (k, j)),
            pl.BlockSpec((1, tn), lambda i, j, k: (0, j)),
        ],
        out_specs=pl.BlockSpec((tm, tn), lambda i, j, k: (i, j)),
        scratch_shapes=[pltpu.VMEM((tm, tn), jnp.float32)],
        compiler_params=pltpu.CompilerParams(
            dimension_semantics=("parallel", "parallel", "arbitrary"),
            vmem_limit_bytes=VMEM_LIMIT),
    )(x, w, b.reshape(1, N))


def _ln_linear_kernel(x_ref, g_ref, bln_ref, w_ref, b_ref, o_ref, y_scr, *,
                      eps, activation):
    # LayerNorm (f32 stats) computed once per row-tile into a bf16 VMEM scratch
    # and reused across all N tiles of the consuming linear.
    j = pl.program_id(1)

    @pl.when(j == 0)
    def _():
        x = x_ref[...].astype(jnp.float32)
        mean = jnp.mean(x, axis=-1, keepdims=True)
        xc = x - mean
        var = jnp.mean(xc * xc, axis=-1, keepdims=True)
        y = xc * jax.lax.rsqrt(var + eps) * g_ref[...] + bln_ref[...]
        y_scr[...] = y.astype(jnp.bfloat16)

    out = jnp.dot(y_scr[...], w_ref[...],
                  preferred_element_type=jnp.float32) + b_ref[...]
    if activation == "quick_gelu":
        out = out * jax.nn.sigmoid(1.702 * out)
    o_ref[...] = out.astype(o_ref.dtype)


def ln_linear_pallas(x, gamma, beta, w, b, *, activation=None, eps=1e-5,
                     out_dtype=jnp.bfloat16, tm_cap=256, tn_cap=512):
    M, K = x.shape
    N = w.shape[1]
    tm = _pick_tile(M, tm_cap, 8)
    tn = _pick_tile(N, tn_cap, 128, prefer=256)
    grid = (M // tm, N // tn)
    return pl.pallas_call(
        functools.partial(_ln_linear_kernel, eps=eps, activation=activation),
        out_shape=jax.ShapeDtypeStruct((M, N), out_dtype),
        grid=grid,
        in_specs=[
            pl.BlockSpec((tm, K), lambda i, j: (i, 0)),
            pl.BlockSpec((1, K), lambda i, j: (0, 0)),
            pl.BlockSpec((1, K), lambda i, j: (0, 0)),
            pl.BlockSpec((K, tn), lambda i, j: (0, j)),
            pl.BlockSpec((1, tn), lambda i, j: (0, j)),
        ],
        out_specs=pl.BlockSpec((tm, tn), lambda i, j: (i, j)),
        scratch_shapes=[pltpu.VMEM((tm, K), jnp.bfloat16)],
        compiler_params=pltpu.CompilerParams(
            dimension_semantics=("parallel", "arbitrary"),
            vmem_limit_bytes=VMEM_LIMIT),
    )(x, gamma.reshape(1, K), beta.reshape(1, K), w, b.reshape(1, N))


def _mlp_kernel(x_ref, g_ref, bln_ref, w1_ref, b1_ref, w2_ref, b2_ref, o_ref,
                y_scr, acc_ref, *, eps):
    # Fused: out = x + fc2(quick_gelu(fc1(LN(x)))), with the hidden dimension
    # gridded so fc1/fc2 weight chunks are streamed (never held whole in VMEM).
    j = pl.program_id(1)

    @pl.when(j == 0)
    def _():
        x = x_ref[...].astype(jnp.float32)
        mean = jnp.mean(x, axis=-1, keepdims=True)
        xc = x - mean
        var = jnp.mean(xc * xc, axis=-1, keepdims=True)
        y = xc * jax.lax.rsqrt(var + eps) * g_ref[...] + bln_ref[...]
        y_scr[...] = y.astype(jnp.bfloat16)
        acc_ref[...] = jnp.zeros_like(acc_ref)

    h = jnp.dot(y_scr[...], w1_ref[...],
                preferred_element_type=jnp.float32) + b1_ref[...]
    h = h * jax.nn.sigmoid(1.702 * h)                   # QuickGELU
    acc_ref[...] += jnp.dot(h.astype(jnp.bfloat16), w2_ref[...],
                            preferred_element_type=jnp.float32)

    @pl.when(j == pl.num_programs(1) - 1)
    def _():
        o_ref[...] = (x_ref[...].astype(jnp.float32) + acc_ref[...]
                      + b2_ref[...]).astype(o_ref.dtype)


def mlp_pallas(x, gamma, beta, w1, b1, w2, b2, *, eps=1e-5,
               out_dtype=jnp.float32, tm_cap=256, th_cap=1024):
    M, D = x.shape
    Hd = w1.shape[1]
    tm = _pick_tile(M, tm_cap, 8)
    th = _pick_tile(Hd, th_cap, 128, prefer=256)
    grid = (M // tm, Hd // th)
    return pl.pallas_call(
        functools.partial(_mlp_kernel, eps=eps),
        out_shape=jax.ShapeDtypeStruct((M, D), out_dtype),
        grid=grid,
        in_specs=[
            pl.BlockSpec((tm, D), lambda i, j: (i, 0)),
            pl.BlockSpec((1, D), lambda i, j: (0, 0)),
            pl.BlockSpec((1, D), lambda i, j: (0, 0)),
            pl.BlockSpec((D, th), lambda i, j: (0, j)),
            pl.BlockSpec((1, th), lambda i, j: (0, j)),
            pl.BlockSpec((th, D), lambda i, j: (j, 0)),
            pl.BlockSpec((1, D), lambda i, j: (0, 0)),
        ],
        out_specs=pl.BlockSpec((tm, D), lambda i, j: (i, 0)),
        scratch_shapes=[pltpu.VMEM((tm, D), jnp.bfloat16),
                        pltpu.VMEM((tm, D), jnp.float32)],
        compiler_params=pltpu.CompilerParams(
            dimension_semantics=("parallel", "arbitrary"),
            vmem_limit_bytes=VMEM_LIMIT),
    )(x, gamma.reshape(1, D), beta.reshape(1, D),
      w1, b1.reshape(1, Hd), w2, b2.reshape(1, D))


def _layernorm_kernel(x_ref, g_ref, b_ref, o_ref, *, eps):
    x = x_ref[...].astype(jnp.float32)
    mean = jnp.mean(x, axis=-1, keepdims=True)
    xc = x - mean
    var = jnp.mean(xc * xc, axis=-1, keepdims=True)
    o_ref[...] = ((xc * jax.lax.rsqrt(var + eps)) * g_ref[...]
                  + b_ref[...]).astype(o_ref.dtype)


def layernorm_pallas(x, gamma, beta, *, eps=1e-5, out_dtype=jnp.float32,
                     tm_cap=512):
    M, D = x.shape
    tm = _pick_tile(M, tm_cap, 8)
    return pl.pallas_call(
        functools.partial(_layernorm_kernel, eps=eps),
        out_shape=jax.ShapeDtypeStruct((M, D), out_dtype),
        grid=(M // tm,),
        in_specs=[
            pl.BlockSpec((tm, D), lambda i: (i, 0)),
            pl.BlockSpec((1, D), lambda i: (0, 0)),
            pl.BlockSpec((1, D), lambda i: (0, 0)),
        ],
        out_specs=pl.BlockSpec((tm, D), lambda i: (i, 0)),
        compiler_params=pltpu.CompilerParams(
            dimension_semantics=("parallel",),
            vmem_limit_bytes=VMEM_LIMIT),
    )(x, gamma.reshape(1, D), beta.reshape(1, D))


def _head_group_width(width, head_dim):
    # Smallest 128-lane-aligned head group (maximizes grid steps); full width
    # when width < 128 (full-extent lane block is always layout-legal).
    g = 128
    while g <= width:
        if width % g == 0 and g % head_dim == 0:
            return g
        g += 128
    return width


def _attn_proj_kernel(q_ref, k_ref, v_ref, w_ref, b_ref, res_ref, o_ref,
                      acc_ref, *, heads_per_group, head_dim, seq_len, scale):
    # One (batch, head-group) tile per grid step. Softmax in f32, padded keys
    # masked, per-head output projection accumulated into an f32 VMEM scratch
    # (the head context never leaves VMEM); residual + bias added at the end.
    g = pl.program_id(1)

    @pl.when(g == 0)
    def _():
        acc_ref[...] = jnp.zeros_like(acc_ref)

    sp = q_ref.shape[1]
    if seq_len < sp:
        col = jax.lax.broadcasted_iota(jnp.int32, (sp, sp), 1)
        key_mask = col < seq_len
    else:
        key_mask = None

    contrib = None
    for hh in range(heads_per_group):
        lo = hh * head_dim
        hi = lo + head_dim
        q = q_ref[0][:, lo:hi]
        k = k_ref[0][:, lo:hi]
        v = v_ref[0][:, lo:hi]
        s = jax.lax.dot_general(q, k, (((1,), (1,)), ((), ())),
                                preferred_element_type=jnp.float32) * scale
        if key_mask is not None:
            s = jnp.where(key_mask, s, jnp.float32(-1e30))
        s = s - jnp.max(s, axis=-1, keepdims=True)
        p = jnp.exp(s)
        p = p / jnp.sum(p, axis=-1, keepdims=True)       # exact reciprocal
        ctx = jnp.dot(p.astype(jnp.bfloat16), v,
                      preferred_element_type=jnp.float32)
        c = jnp.dot(ctx.astype(jnp.bfloat16), w_ref[lo:hi, :],
                    preferred_element_type=jnp.float32)
        contrib = c if contrib is None else contrib + c
    acc_ref[...] += contrib

    @pl.when(g == pl.num_programs(1) - 1)
    def _():
        o_ref[0] = (acc_ref[...] + b_ref[...]
                    + res_ref[0].astype(jnp.float32)).astype(o_ref.dtype)


def attention_proj_pallas(qkv, residual, w_out, b_out, *, heads, head_dim,
                          seq_len, scale, out_dtype=jnp.float32):
    B, Sp, _ = qkv.shape
    width = heads * head_dim
    # Split packed QKV at width-multiple (lane-aligned) offsets in the wrapper;
    # per-group blocks below are 128-lane multiples or the full width.
    q = qkv[:, :, :width]
    k = qkv[:, :, width:2 * width]
    v = qkv[:, :, 2 * width:]
    gw = _head_group_width(width, head_dim)
    ng = width // gw
    hpg = gw // head_dim
    return pl.pallas_call(
        functools.partial(_attn_proj_kernel, heads_per_group=hpg,
                          head_dim=head_dim, seq_len=seq_len, scale=scale),
        out_shape=jax.ShapeDtypeStruct((B, Sp, width), out_dtype),
        grid=(B, ng),
        in_specs=[
            pl.BlockSpec((1, Sp, gw), lambda b, g: (b, 0, g)),
            pl.BlockSpec((1, Sp, gw), lambda b, g: (b, 0, g)),
            pl.BlockSpec((1, Sp, gw), lambda b, g: (b, 0, g)),
            pl.BlockSpec((gw, width), lambda b, g: (g, 0)),
            pl.BlockSpec((1, width), lambda b, g: (0, 0)),
            pl.BlockSpec((1, Sp, width), lambda b, g: (b, 0, 0)),
        ],
        out_specs=pl.BlockSpec((1, Sp, width), lambda b, g: (b, 0, 0)),
        scratch_shapes=[pltpu.VMEM((Sp, width), jnp.float32)],
        compiler_params=pltpu.CompilerParams(
            dimension_semantics=("parallel", "arbitrary"),
            vmem_limit_bytes=VMEM_LIMIT),
    )(q, k, v, w_out, b_out.reshape(1, width), residual)


# ------------------------------ Model (glue) ------------------------------- #

def init_params(key, *, width, layers, heads, patch, out_dim, grid_size):
    del heads
    seq = grid_size * grid_size + 1
    keys = iter(jax.random.split(key, 4 + layers * 4))

    def nrm(shape, dtype, scale=0.02):
        return (scale * jax.random.normal(next(keys), shape, jnp.float32)).astype(dtype)

    ones = lambda n: jnp.ones((n,), jnp.float32)
    zeros = lambda n: jnp.zeros((n,), jnp.float32)

    p = {
        # conv1 weight, flattened row order (C, ph, pw), kept f32 for preprocess fold
        "conv_w": nrm((3 * patch * patch, width), jnp.float32),
        "class_emb": nrm((width,), jnp.float32),
        "pos_emb": nrm((seq, width), jnp.float32),
        "ln_pre": (ones(width), zeros(width)),
        "ln_post": (ones(width), zeros(width)),
        "blocks": [],
    }
    for _ in range(layers):
        p["blocks"].append({
            "ln1": (ones(width), zeros(width)),
            "attn_in_w": nrm((width, 3 * width), jnp.bfloat16),
            "attn_in_b": zeros(3 * width),
            "attn_out_w": nrm((width, width), jnp.bfloat16),
            "attn_out_b": zeros(width),
            "ln2": (ones(width), zeros(width)),
            "fc1_w": nrm((width, 4 * width), jnp.bfloat16),
            "fc1_b": zeros(4 * width),
            "fc2_w": nrm((4 * width, width), jnp.bfloat16),
            "fc2_b": zeros(width),
        })
    p["proj"] = nrm((width, out_dim), jnp.bfloat16)
    return p


def clip_image_encode(x_nchw, params, *, width, heads, patch):
    B, C, H, W = x_nchw.shape
    G = H // patch
    S = G * G + 1
    Sp = ((S + 7) // 8) * 8          # pad sequence to a multiple of 8 sublanes
    head_dim = width // heads
    scale = 1.0 / float(head_dim) ** 0.5

    # CLIP preprocess normalization folded into the patch-embedding matmul
    # (per-channel affine: (x - mean) / std == x @ (W/std) - (mean/std) @ W).
    # Bias computed from the same bf16-cast folded weight used by the matmul.
    mean = jnp.array([0.48145466, 0.4578275, 0.40821073], jnp.float32)
    std = jnp.array([0.26862954, 0.26130258, 0.27577711], jnp.float32)
    inv_std_rows = jnp.repeat(1.0 / std, patch * patch)              # (C*p*p,)
    mean_rows = jnp.repeat(mean, patch * patch)                      # (C*p*p,)
    conv_w_fold = (params["conv_w"] * inv_std_rows[:, None]).astype(jnp.bfloat16)
    conv_b_fold = -(mean_rows * inv_std_rows) @ conv_w_fold.astype(jnp.float32)

    # conv1 (kernel=stride=patch, no bias) as patch-extraction + matmul.
    patches = x_nchw.reshape(B, C, G, patch, G, patch).transpose(0, 2, 4, 1, 3, 5)
    patches = patches.reshape(B * G * G, C * patch * patch)
    emb = matmul_pallas(patches, conv_w_fold, conv_b_fold,
                        out_dtype=jnp.bfloat16)
    emb = emb.reshape(B, G * G, width).astype(jnp.float32)

    # prepend class token, add positional embedding, pad seq, ln_pre.
    cls = jnp.broadcast_to(params["class_emb"].reshape(1, 1, width), (B, 1, width))
    tokens = jnp.concatenate([cls, emb], axis=1) + params["pos_emb"][None]
    if Sp > S:
        tokens = jnp.pad(tokens, ((0, 0), (0, Sp - S), (0, 0)))
    M = B * Sp

    g, b_ = params["ln_pre"]
    h = layernorm_pallas(tokens.reshape(M, width), g, b_)   # f32 residual stream

    # transformer blocks: pre-LN MHA (LN + out-proj + residual fused) and
    # QuickGELU MLP (LN + residual fused, hidden dim streamed).
    for blk in params["blocks"]:
        g1, bb1 = blk["ln1"]
        qkv = ln_linear_pallas(h, g1, bb1, blk["attn_in_w"], blk["attn_in_b"],
                               out_dtype=jnp.bfloat16)       # (M, 3*width) bf16
        h = attention_proj_pallas(qkv.reshape(B, Sp, 3 * width),
                                  h.reshape(B, Sp, width),
                                  blk["attn_out_w"], blk["attn_out_b"],
                                  heads=heads, head_dim=head_dim,
                                  seq_len=S, scale=scale).reshape(M, width)
        g2, bb2 = blk["ln2"]
        h = mlp_pallas(h, g2, bb2, blk["fc1_w"], blk["fc1_b"],
                       blk["fc2_w"], blk["fc2_b"])

    # ln_post on the class token fused with the output projection (no bias).
    gp, bp = params["ln_post"]
    cls_tok = h.reshape(B, Sp, width)[:, 0, :]
    out_dim = params["proj"].shape[1]
    out = ln_linear_pallas(cls_tok, gp, bp, params["proj"],
                           jnp.zeros((out_dim,), jnp.float32),
                           out_dtype=jnp.float32)
    return out.astype(jnp.float32)


# --------------------------------- Driver ---------------------------------- #

if __name__ == "__main__":
    # Small synthetic ViT config (ViT-B/32 analogue at toy scale).
    WIDTH, LAYERS, HEADS, PATCH, OUT_DIM = 64, 2, 4, 8, 32
    B, C, H, W = 2, 3, 32, 32
    G = H // PATCH

    key = jax.random.PRNGKey(0)
    kx, kp = jax.random.split(key)
    x = jax.random.uniform(kx, (B, C, H, W), jnp.float32)      # "pixels" in [0, 1]
    params = init_params(kp, width=WIDTH, layers=LAYERS, heads=HEADS,
                         patch=PATCH, out_dim=OUT_DIM, grid_size=G)

    feats = clip_image_encode(x, params, width=WIDTH, heads=HEADS, patch=PATCH)
    feats = jax.block_until_ready(feats)
    assert feats.shape == (B, OUT_DIM), feats.shape
    assert feats.dtype == jnp.float32
    assert bool(jnp.all(jnp.isfinite(feats)))
    print("KERNEL_OK")
</pallas_src>

<mosaic_0001>
module attributes {stable_mosaic.version = 11 : i64} {
  func.func @_matmul_kernel(%arg0: i32, %arg1: i32, %arg2: i32, %arg3: memref<32x192xf32, #tpu.memory_space<vmem>>, %arg4: memref<192x64xbf16, #tpu.memory_space<vmem>>, %arg5: memref<1x64xf32, #tpu.memory_space<vmem>>, %arg6: memref<32x64xbf16, #tpu.memory_space<vmem>>, %arg7: memref<32x64xf32, #tpu.memory_space<vmem>>) attributes {dimension_semantics = [#tpu.dimension_semantics<parallel>, #tpu.dimension_semantics<parallel>, #tpu.dimension_semantics<arbitrary>], iteration_bounds = array<i64: 1, 1, 1>, scalar_prefetch = 0 : i64, scratch_operands = 1 : i64, tpu.core_type = #tpu.core_type<tc>, window_params = [{transform_indices = @transform_0, window_bounds = array<i64: 32, 192>}, {transform_indices = @transform_1, window_bounds = array<i64: 192, 64>}, {transform_indices = @transform_2, window_bounds = array<i64: 1, 64>}, {transform_indices = @transform_3, window_bounds = array<i64: 32, 64>}]} {
    %c0_i32 = arith.constant 0 : i32
    %0 = arith.cmpi eq, %arg2, %c0_i32 : i32
    %1 = arith.extui %0 : i1 to i32
    %c0_i32_0 = arith.constant 0 : i32
    %2 = arith.cmpi ne, %1, %c0_i32_0 : i32
    scf.if %2 {
      %cst_10 = arith.constant 0.000000e+00 : f32
      %13 = vector.broadcast %cst_10 : f32 to vector<32x64xf32>
      %c0_11 = arith.constant 0 : index
      %c0_12 = arith.constant 0 : index
      %14 = vector.load %arg7[%c0_11, %c0_12] : memref<32x64xf32, #tpu.memory_space<vmem>>, vector<32x64xf32>
      tpu.vector_store %arg7[%c0_11, %c0_12], %13 {strides = array<i32>} : memref<32x64xf32, #tpu.memory_space<vmem>>, vector<32x64xf32>,
    } else {
    }
    %c0 = arith.constant 0 : index
    %c0_1 = arith.constant 0 : index
    %3 = vector.load %arg7[%c0, %c0_1] : memref<32x64xf32, #tpu.memory_space<vmem>>, vector<32x64xf32>
    %c0_2 = arith.constant 0 : index
    %c0_3 = arith.constant 0 : index
    %4 = vector.load %arg3[%c0_2, %c0_3] : memref<32x192xf32, #tpu.memory_space<vmem>>, vector<32x192xf32>
    %5 = arith.truncf %4 : vector<32x192xf32> to vector<32x192xbf16>
    %c0_4 = arith.constant 0 : index
    %c0_5 = arith.constant 0 : index
    %6 = vector.load %arg4[%c0_4, %c0_5] : memref<192x64xbf16, #tpu.memory_space<vmem>>, vector<192x64xbf16>
    %cst = arith.constant dense<0.000000e+00> : vector<32x64xf32>
    %7 = tpu.matmul %5, %6, %cst {dimension_numbers = #tpu.dot_dimension_numbers<[1], [0], [0], [1], [0, 0, 1, 1], [], []>} : vector<32x192xbf16>, vector<192x64xbf16>, vector<32x64xf32> -> vector<32x64xf32>
    %8 = arith.addf %3, %7 : vector<32x64xf32>
    %c0_6 = arith.constant 0 : index
    %c0_7 = arith.constant 0 : index
    %9 = vector.load %arg7[%c0_6, %c0_7] : memref<32x64xf32, #tpu.memory_space<vmem>>, vector<32x64xf32>
    tpu.vector_store %arg7[%c0_6, %c0_7], %8 {strides = array<i32>} : memref<32x64xf32, #tpu.memory_space<vmem>>, vector<32x64xf32>,
    %c0_i32_8 = arith.constant 0 : i32
    %10 = arith.cmpi eq, %arg2, %c0_i32_8 : i32
    %11 = arith.extui %10 : i1 to i32
    %c0_i32_9 = arith.constant 0 : i32
    %12 = arith.cmpi ne, %11, %c0_i32_9 : i32
    scf.if %12 {
      %c0_10 = arith.constant 0 : index
      %c0_11 = arith.constant 0 : index
      %13 = vector.load %arg7[%c0_10, %c0_11] : memref<32x64xf32, #tpu.memory_space<vmem>>, vector<32x64xf32>
      %c0_12 = arith.constant 0 : index
      %c0_13 = arith.constant 0 : index
      %14 = vector.load %arg5[%c0_12, %c0_13] : memref<1x64xf32, #tpu.memory_space<vmem>>, vector<1x64xf32>
      %15 = vector.broadcast %14 : vector<1x64xf32> to vector<32x64xf32>
      %16 = arith.addf %13, %15 : vector<32x64xf32>
      %17 = arith.truncf %16 : vector<32x64xf32> to vector<32x64xbf16>
      %c0_14 = arith.constant 0 : index
      %c0_15 = arith.constant 0 : index
      %18 = vector.load %arg6[%c0_14, %c0_15] : memref<32x64xbf16, #tpu.memory_space<vmem>>, vector<32x64xbf16>
      tpu.vector_store %arg6[%c0_14, %c0_15], %17 {strides = array<i32>} : memref<32x64xbf16, #tpu.memory_space<vmem>>, vector<32x64xbf16>,
    } else {
    }
    return
  }
  func.func @transform_0(%arg0: i32, %arg1: i32, %arg2: i32) -> (i32, i32) {
    %c0_i32 = arith.constant 0 : i32
    return %arg0, %arg2 : i32, i32
  }
  func.func @transform_1(%arg0: i32, %arg1: i32, %arg2: i32) -> (i32, i32) {
    %c0_i32 = arith.constant 0 : i32
    return %arg2, %arg1 : i32, i32
  }
  func.func @transform_2(%arg0: i32, %arg1: i32, %arg2: i32) -> (i32, i32) {
    %c0_i32 = arith.constant 0 : i32
    %c0_i32_0 = arith.constant 0 : i32
    return %c0_i32, %arg1 : i32, i32
  }
  func.func @transform_3(%arg0: i32, %arg1: i32, %arg2: i32) -> (i32, i32) {
    %c0_i32 = arith.constant 0 : i32
    return %arg0, %arg1 : i32, i32
  }
}

</mosaic_0001>

<bundles_post_ra>
// kernel: tpu_custom_call.1
= control target key start
LH: loop header
LB: loop body
LE: loop exit
PB: predicated region body
PF: predicated region fallthrough
CT: control target
= control target key end

     0   :  { %v344_v1 = vmov 0   ;;  %vm20_vm0 = vcmask 523264   ;;  %v345_v3 = vmov 0.0   ;;  %s478_s0 = inlined_call_operand.vmem [shape: f32[32,192], index: 0, kind: input, shape index: {}]   ;;  %s479_s1 = inlined_call_operand.vmem [shape: bf16[192,64], index: 1, kind: input, shape index: {}]   ;;  %s480_s2 = inlined_call_operand.vmem [shape: f32[1,64], index: 2, kind: input, shape index: {}]   ;;  %s481_s3 = inlined_call_operand.hbm [shape: bf16[32,64], index: 3, kind: output, shape index: {}]  }
   0x1   :  { %v308_v0 = vld [vmem:[%s479_s1] sm:$0xff]   ;;  %144 = vmatprep.subr.bf16.mxu0 %v344_v1  ;;  %279 = vmatprep.subr.bf16.mxu1 %v344_v1  ;;  %v309_v2 = vld [vmem:[%s479_s1 + $0x8] sm:$0xff]   ;;  %21 = vst.msk [vmem:[#allocation2] sm:$0xff] %vm20_vm0, %v345_v3  ;;  %22 = vst.msk [vmem:[#allocation2 + $0x8] sm:$0xff] %vm20_vm0, %v345_v3 }
   0x2   :  { %145 = vmatpush1.bf16.msra.mxu0 %v308_v0  ;;  %291 = vmatpush1.bf16.msra.mxu1 %v308_v0  ;;  %23 = vst.msk [vmem:[#allocation2 + $0x10] sm:$0xff] %vm20_vm0, %v345_v3  ;;  %24 = vst.msk [vmem:[#allocation2 + $0x18] sm:$0xff] %vm20_vm0, %v345_v3  ;;  %v310_v4 = vld [vmem:[%s479_s1 + $0x10] sm:$0xff]   ;;  %v311_v5 = vld [vmem:[%s479_s1 + $0x18] sm:$0xff]  }
   0x3   :  { %146 = vmatprep.subr.bf16.mxu0 %v344_v1  ;;  %280 = vmatprep.subr.bf16.mxu1 %v344_v1  ;;  %v30_v6 = vld [vmem:[%s478_s0 + $0x8] sm:$0xff]  ;;  %v32_v7 = vld [vmem:[%s478_s0 + $0x18] sm:$0xff]  ;;  %v312_v11 = vld [vmem:[%s479_s1 + $0x20] sm:$0xff]  }
   0x4   :  { %v34_v8 = vld [vmem:[%s478_s0 + $0x28] sm:$0xff]  ;;  %v38_v9 = vpack.c.bf16 %v32_v7, %v30_v6  ;;  %v36_v10 = vld [vmem:[%s478_s0 + $0x38] sm:$0xff] }
   0x5   :  { %v40_v12 = vpack.c.bf16 %v36_v10, %v34_v8 }
   0x6   :  { %147 = vmatpush1.bf16.msra.mxu0 %v309_v2  ;;  %292 = vmatpush1.bf16.msra.mxu1 %v309_v2 }
   0x7   :  { %148 = vmatprep.subr.bf16.mxu0 %v344_v1  ;;  %281 = vmatprep.subr.bf16.mxu1 %v344_v1 }
   0xa   :  { %149 = vmatpush1.bf16.msra.mxu0 %v310_v4  ;;  %293 = vmatpush1.bf16.msra.mxu1 %v310_v4 }
   0xb   :  { %150 = vmatprep.subr.bf16.mxu0 %v344_v1  ;;  %282 = vmatprep.subr.bf16.mxu1 %v344_v1 }
   0xe   :  { %151 = vmatpush1.bf16.msra.mxu0 %v311_v5  ;;  %294 = vmatpush1.bf16.msra.mxu1 %v311_v5 }
   0xf   :  { %152 = vmatprep.subr.bf16.mxu0 %v344_v1  ;;  %283 = vmatprep.subr.bf16.mxu1 %v344_v1 }
  0x10   :  { %8 = vsyncpa [#allocation4], 0  ;;  %268 = vmatprep.mubr.msk.bf16.mxu0 %vm20_vm0, %v38_v9  ;;  %269 = vmatprep.mubr.msk.bf16.mxu1 %vm20_vm0, %v40_v12  ;;  %v313_v13 = vld [vmem:[%s479_s1 + $0x28] sm:$0xff]   ;;  %v314_v14 = vld [vmem:[%s479_s1 + $0x30] sm:$0xff]   ;;  %s346_s25 = smov [#allocation3]   ;;  %vm235_vm1 = vcmask 519168  }
  0x11   :  { %v315_v15 = vld [vmem:[%s479_s1 + $0x38] sm:$0xff]   ;;  %v316_v16 = vld [vmem:[%s479_s1 + $0x40] sm:$0xff]   ;;  %v317_v17 = vld [vmem:[%s479_s1 + $0x48] sm:$0xff]   ;;  %s245_s26 = sshll.u32 %s346_s25, 4  ;;  %s246_s26 = int_to_ptr.vmem [resolvable:$true] %s245_s26 }
  0x12   :  { %153 = vmatpush1.bf16.msra.mxu0 %v312_v11  ;;  %295 = vmatpush1.bf16.msra.mxu1 %v312_v11  ;;  %v318_v18 = vld [vmem:[%s479_s1 + $0x50] sm:$0xff]   ;;  %v319_v19 = vld [vmem:[%s479_s1 + $0x58] sm:$0xff]   ;;  %v29_v20 = vld [vmem:[%s478_s0] sm:$0xff]  ;;  %p325_p1 = scmp.lt.s32.totalorder %s246_s26, %s246_s26 }
  0x13   :  { %154 = vmatprep.subr.bf16.mxu0 %v344_v1  ;;  %284 = vmatprep.subr.bf16.mxu1 %v344_v1  ;;  %v31_v21 = vld [vmem:[%s478_s0 + $0x10] sm:$0xff]  ;;  %v33_v22 = vld [vmem:[%s478_s0 + $0x20] sm:$0xff]  ;;  %v26_v30 = vld [vmem:[#allocation2 + $0x8] sm:$0xff] }
  0x14   :  { %v35_v23 = vld [vmem:[%s478_s0 + $0x30] sm:$0xff]  ;;  %v37_v24 = vpack.c.bf16 %v31_v21, %v29_v20  ;;  %v25_v26 = vld [vmem:[#allocation2] sm:$0xff]  ;;  %v28_v31 = vld [vmem:[#allocation2 + $0x18] sm:$0xff] }
  0x15   :  { %v39_v25 = vpack.c.bf16 %v35_v23, %v33_v22  ;;  %v27_v27 = vld [vmem:[#allocation2 + $0x10] sm:$0xff]  ;;  %v270_v42 = vld [vmem:[%s480_s2] ss:$0 sm:$0xff]  ;;  %s320_s2 = scalar_lea.vmem %s246_s26, 256 }
  0x16   :  { %155 = vmatpush1.bf16.msra.mxu0 %v313_v13  ;;  %296 = vmatpush1.bf16.msra.mxu1 %v313_v13  ;;  %p321_p0 = scmp.ne.s32.totalorder %s246_s26, %s320_s2  ;;  %p326_p2 = scmp.lt.s32.totalorder %s320_s2, %s320_s2 }
  0x17   :  { %156 = vmatprep.subr.bf16.mxu0 %v344_v1  ;;  %285 = vmatprep.subr.bf16.mxu1 %v344_v1 }
  0x18   :  { %p327_p3 = por %p326_p2, %p325_p1 }
  0x1a   :  { %157 = vmatpush1.bf16.msra.mxu0 %v314_v14  ;;  %297 = vmatpush1.bf16.msra.mxu1 %v314_v14  ;;  %p328_p4 = pnand %p327_p3, %p321_p0 }
  0x1b   :  { %158 = vmatprep.subr.bf16.mxu0 %v344_v1  ;;  %286 = vmatprep.subr.bf16.mxu1 %v344_v1 }
  0x1e   :  { %159 = vmatpush1.bf16.msra.mxu0 %v315_v15  ;;  %298 = vmatpush1.bf16.msra.mxu1 %v315_v15 }
  0x1f   :  { %160 = vmatprep.subr.bf16.mxu0 %v344_v1  ;;  %287 = vmatprep.subr.bf16.mxu1 %v344_v1 }
  0x22   :  { %161 = vmatpush1.bf16.msra.mxu0 %v316_v16  ;;  %299 = vmatpush1.bf16.msra.mxu1 %v316_v16 }
  0x23   :  { %162 = vmatprep.subr.bf16.mxu0 %v344_v1  ;;  %288 = vmatprep.subr.bf16.mxu1 %v344_v1 }
  0x26   :  { %163 = vmatpush1.bf16.msra.mxu0 %v317_v17  ;;  %300 = vmatpush1.bf16.msra.mxu1 %v317_v17 }
  0x27   :  { %164 = vmatprep.subr.bf16.mxu0 %v344_v1  ;;  %289 = vmatprep.subr.bf16.mxu1 %v344_v1 }
  0x2a   :  { %165 = vmatpush1.bf16.msra.mxu0 %v318_v18  ;;  %301 = vmatpush1.bf16.msra.mxu1 %v318_v18 }
  0x2b   :  { %166 = vmatprep.subr.bf16.mxu0 %v344_v1  ;;  %290 = vmatprep.subr.bf16.mxu1 %v344_v1 }
  0x2e   :  { %167 = vmatpush1.bf16.msra.mxu0 %v319_v19  ;;  %302 = vmatpush1.bf16.msra.mxu1 %v319_v19 }
  0x31   :  { %177 = vmatmul.mubr.bf16.vlgmr.msra.gmra.mrb[0].mxu0 %v37_v24  ;;  %185 = vmatmul.mubr.bf16.vlgmr.msra.gmra.mrb[0].mxu1 %v39_v25 }
 0x104   :  { %v178_v28 = vpop.f32.mrb[0].mxu0  ;;  %v186_v29 = vpop.f32.mrb[0].mxu1 }
 0x105   :  { %v193_v32 = vadd.f32 %v178_v28, %v25_v26  ;;  %v195_v33 = vadd.f32 %v186_v29, %v27_v27  ;;  %v180_v34 = vpop.f32.mrb[1].mxu0  ;;  %v188_v35 = vpop.f32.mrb[1].mxu1 }
 0x106   :  { %v181_v36 = vpop.f32.mrb[2].mxu0  ;;  %v189_v37 = vpop.f32.mrb[2].mxu1 }
 0x107   :  { %197 = vst.msk [vmem:[#allocation2] sm:$0xff] %vm20_vm0, %v193_v32  ;;  %199 = vst.msk [vmem:[#allocation2 + $0x10] sm:$0xff] %vm20_vm0, %v195_v33  ;;  %v194_v38 = vadd.f32 %v181_v36, %v26_v30  ;;  %v196_v39 = vadd.f32 %v189_v37, %v28_v31  ;;  %v183_v40 = vpop.f32.mrb[3].mxu0  ;;  %v191_v41 = vpop.f32.mrb[3].mxu1 }
 0x109   :  { %198 = vst.msk [vmem:[#allocation2 + $0x8] sm:$0xff] %vm20_vm0, %v194_v38  ;;  %200 = vst.msk [vmem:[#allocation2 + $0x18] sm:$0xff] %vm20_vm0, %v196_v39 }
 0x10e   :  { %v204_v43 = vld [vmem:[#allocation2] sm:$0xff]  ;;  %v206_v44 = vld [vmem:[#allocation2 + $0x10] sm:$0xff] }
 0x10f   :  { %v215_v45 = vadd.f32 %v270_v42, %v204_v43  ;;  %v217_v46 = vadd.f32 %v270_v42, %v206_v44 }
 0x110   :  { %v205_v47 = vld [vmem:[#allocation2 + $0x8] sm:$0xff]  ;;  %v207_v48 = vld [vmem:[#allocation2 + $0x18] sm:$0xff] }
 0x111   :  { %v216_v49 = vadd.f32 %v270_v42, %v205_v47  ;;  %v218_v50 = vadd.f32 %v270_v42, %v207_v48  ;;  %v275_v51 = vpack.c.bf16 %v215_v45, %v215_v45  ;;  %v277_v52 = vpack.c.bf16 %v217_v46, %v217_v46 }
 0x113   :  { %v276_v53 = vpack.c.bf16 %v216_v49, %v216_v49  ;;  %v278_v54 = vpack.c.bf16 %v218_v50, %v218_v50  ;;  %236 = vst.msk [vmem:[#allocation3] sm:$0xf] %vm235_vm1, %v275_v51  ;;  %238 = vst.msk [vmem:[#allocation3 + $0x8] sm:$0xf] %vm235_vm1, %v277_v52 }
 0x115   :  { %237 = vst.msk [vmem:[#allocation3 + $0x4] sm:$0xf] %vm235_vm1, %v276_v53  ;;  %239 = vst.msk [vmem:[#allocation3 + $0xc] sm:$0xf] %vm235_vm1, %v278_v54 }
 0x116   :  { %331 = shalt.err (!%p328_p4)
}
 0x117   :  { %s332_s29 = scalar_lea.hbm %s481_s3, 256 }
 0x118   :  { %p333_p5 = scmp.ne.s32.totalorder %s481_s3, %s332_s29  ;;  %p336_p6 = scmp.lt.u32.totalorder %s332_s29, %s481_s3 }
 0x11a   :  { %p338_p7 = pnand %p336_p6, %p333_p5 }
 0x11c   :  { %341 = shalt.err (!%p338_p7)
}
 0x11d   :  { %s347_s7 = smov 64   ;;  %s348_s8 = smov 4  }
 0x11e   :  { %251 = dma.vmem_to_hbm [thread:$0]  %s246_s26, 256, %s481_s3, [#allocation4], %s347_s7, %s347_s7, %s348_s8  }
 0x11f   :  { %342 = dma.done.wait [#allocation4], 256  }
 0x120   :  { %343 = vsyncadd [#allocation4], 4294967040 }
 0x121   :  { %255 = vsyncpa [#allocation4], 1 }

</bundles_post_ra>
